<compile_context>
chip_gen: v6e
topology: v6e:2x2x1
jax: 0.10.0
libtpu: 0.0.40
codegen_flags: <defaults>
</compile_context>

<pallas_src>
import jax
import jax.numpy as jnp
from jax.experimental import pallas as pl
from jax.experimental.pallas import tpu as pltpu

_LANE = 128
_SUBLANE = 8
_TD_CAP = 512                  # lane-dense tile cap (~85% of measured copy roofline)
_VMEM_STEP_BUDGET = 12 << 20   # (2 inputs + 1 output) x 2 buffers per step
_VMEM_LIMIT = 32 << 20         # explicit scoped-VMEM limit; safe on v5e/v6e/v7x
_SMALL_BYPASS_BYTES = 1 << 20  # below this, XLA's native concat wins


def _sublane_pack(dtype) -> int:
    """Rows per packed sublane tile: 8 for f32, 16 for bf16, 32 for int8."""
    itemsize = jnp.dtype(dtype).itemsize
    return _SUBLANE * max(1, 4 // itemsize)


def _pick_tile_d(D: int) -> int:
    if D <= _LANE:
        return D  # full-dim block (legal exception to the multiple-of-128 rule)
    # Largest multiple of 128 <= cap; ragged last block handled by pl.cdiv grid.
    return min(_TD_CAP, (D // _LANE) * _LANE)


def _pick_tile_n(N: int, TD: int, itemsize: int, pack: int) -> int:
    """Largest divisor of N that is a multiple of `pack` and fits the VMEM budget."""
    cap = _VMEM_STEP_BUDGET // (6 * TD * itemsize)  # 6 live blocks per grid step
    cap = max(pack, min(cap, 1024, N))
    cap = (cap // pack) * pack
    for t in range(cap, 0, -pack):
        if N % t == 0:
            return t
    return pack  # unreachable when N % pack == 0 (guaranteed by caller)


def _concat_kernel(h_ref, hn_ref, out_ref):
    branch = pl.program_id(2)

    @pl.when(branch == 0)
    def _():
        out_ref[...] = h_ref[...]      # rows [0, N) of the logical concat

    @pl.when(branch == 1)
    def _():
        out_ref[...] = hn_ref[...]     # rows [N, 2N) of the logical concat


def _concat_rows_pallas(h, hn):
    N, D = h.shape
    itemsize = jnp.dtype(h.dtype).itemsize
    pack = _sublane_pack(h.dtype)
    TD = _pick_tile_d(D)
    TN = _pick_tile_n(N, TD, itemsize, pack)
    rt = N // TN                 # row tiles per branch (TN divides N exactly)
    gd = pl.cdiv(D, TD)          # ragged last D block allowed

    return pl.pallas_call(
        _concat_kernel,
        out_shape=jax.ShapeDtypeStruct((2 * N, D), h.dtype),
        grid=(rt, gd, 2),
        in_specs=[
            pl.BlockSpec((TN, TD), lambda i, j, b: (i, j)),   # h
            pl.BlockSpec((TN, TD), lambda i, j, b: (i, j)),   # hn
        ],
        # Branch b writes output row-block b*rt + i: block-boundary aligned stores.
        out_specs=pl.BlockSpec((TN, TD), lambda i, j, b: (b * rt + i, j)),
        compiler_params=pltpu.CompilerParams(
            dimension_semantics=("parallel", "parallel", "arbitrary"),
            vmem_limit_bytes=_VMEM_LIMIT),
    )(h, hn)


def single_branch_contrast(h, g, hn, *, use_pallas=None):
    """Forward of SingleBranchContrast (neg_sample path).

    h: (N, D) node embeddings, g: (1, D) graph embedding, hn: (N, D) corrupted
    node embeddings. Returns (anchor, sample, pos_mask, neg_mask).
    """
    assert g.ndim == 2 and g.shape[0] == 1, "neg_sample path requires num_graphs == 1"
    assert h.shape == hn.shape and h.dtype == hn.dtype
    N, D = h.shape
    pack = _sublane_pack(h.dtype)
    total_bytes = 2 * N * D * jnp.dtype(h.dtype).itemsize

    if use_pallas is None:
        use_pallas = (N % pack == 0) and (total_bytes >= _SMALL_BYPASS_BYTES)

    if use_pallas:
        assert N % pack == 0, (
            f"Pallas path needs N % {pack} == 0 for unmasked full-tile stores; "
            "the jnp.concatenate fallback handles other shapes.")
        sample = _concat_rows_pallas(h, hn)
    else:
        # TODO(synk): the biggest win is to never materialize `sample` and feed
        # h/hn straight into the downstream anchor @ sample^T similarity kernel;
        # kept here because the module's forward() contractually returns it.
        sample = jnp.concatenate([h, hn], axis=0)

    # anchor is g itself; masks are data-independent constants (XLA folds them).
    anchor = g
    pos_mask = (jax.lax.iota(jnp.int32, 2 * N)[None, :] < N).astype(jnp.float32)
    neg_mask = 1.0 - pos_mask
    return anchor, sample, pos_mask, neg_mask


def _check(h, g, hn, out):
    anchor, sample, pos_mask, neg_mask = out
    N = h.shape[0]
    ref_sample = jnp.concatenate([h, hn], axis=0)
    ref_pos = jnp.concatenate(
        [jnp.ones((1, N), jnp.float32), jnp.zeros((1, N), jnp.float32)], axis=1)
    assert anchor.shape == g.shape and bool(jnp.array_equal(anchor, g))
    assert sample.shape == ref_sample.shape
    assert bool(jnp.array_equal(sample, ref_sample))
    assert pos_mask.shape == (1, 2 * N) and neg_mask.shape == (1, 2 * N)
    assert bool(jnp.array_equal(pos_mask, ref_pos))
    assert bool(jnp.array_equal(neg_mask, 1.0 - ref_pos))


if __name__ == "__main__":
    key = jax.random.PRNGKey(0)
    ks = jax.random.split(key, 9)

    # 1) Module-scale shapes (num_nodes=8, hidden=32): small-size bypass path.
    N, D = 8, 32
    h = jax.random.normal(ks[0], (N, D), dtype=jnp.float32)
    g = jax.random.normal(ks[1], (1, D), dtype=jnp.float32)
    hn = jax.random.normal(ks[2], (N, D), dtype=jnp.float32)
    out_small = jax.block_until_ready(single_branch_contrast(h, g, hn))
    _check(h, g, hn, out_small)

    # 2) Pallas path (forced), clean tiling: N=64, D=256 -> grid (1, 1, 2).
    N2, D2 = 64, 256
    h2 = jax.random.normal(ks[3], (N2, D2), dtype=jnp.float32)
    g2 = jax.random.normal(ks[4], (1, D2), dtype=jnp.float32)
    hn2 = jax.random.normal(ks[5], (N2, D2), dtype=jnp.float32)
    out2 = jax.block_until_ready(
        single_branch_contrast(h2, g2, hn2, use_pallas=True))
    _check(h2, g2, hn2, out2)

    # 3) Pallas path (forced), ragged last D block: N=64, D=320 -> TD=256, grid (1, 2, 2).
    N3, D3 = 64, 320
    h3 = jax.random.normal(ks[6], (N3, D3), dtype=jnp.float32)
    g3 = jax.random.normal(ks[7], (1, D3), dtype=jnp.float32)
    hn3 = jax.random.normal(ks[8], (N3, D3), dtype=jnp.float32)
    out3 = jax.block_until_ready(
        single_branch_contrast(h3, g3, hn3, use_pallas=True))
    _check(h3, g3, hn3, out3)

    print("KERNEL_OK")
</pallas_src>

<mosaic_0001>
module attributes {stable_mosaic.version = 11 : i64} {
  func.func @_concat_kernel(%arg0: i32, %arg1: i32, %arg2: i32, %arg3: memref<64x256xf32, #tpu.memory_space<vmem>>, %arg4: memref<64x256xf32, #tpu.memory_space<vmem>>, %arg5: memref<64x256xf32, #tpu.memory_space<vmem>>) attributes {dimension_semantics = [#tpu.dimension_semantics<parallel>, #tpu.dimension_semantics<parallel>, #tpu.dimension_semantics<arbitrary>], iteration_bounds = array<i64: 1, 1, 2>, scalar_prefetch = 0 : i64, scratch_operands = 0 : i64, tpu.core_type = #tpu.core_type<tc>, window_params = [{transform_indices = @transform_0, window_bounds = array<i64: 64, 256>}, {transform_indices = @transform_1, window_bounds = array<i64: 64, 256>}, {transform_indices = @transform_2, window_bounds = array<i64: 64, 256>}]} {
    %c0_i32 = arith.constant 0 : i32
    %0 = arith.cmpi eq, %arg2, %c0_i32 : i32
    %1 = arith.extui %0 : i1 to i32
    %c0_i32_0 = arith.constant 0 : i32
    %2 = arith.cmpi ne, %1, %c0_i32_0 : i32
    scf.if %2 {
      %c0 = arith.constant 0 : index
      %c0_2 = arith.constant 0 : index
      %6 = vector.load %arg3[%c0, %c0_2] : memref<64x256xf32, #tpu.memory_space<vmem>>, vector<64x256xf32>
      %c0_3 = arith.constant 0 : index
      %c0_4 = arith.constant 0 : index
      %7 = vector.load %arg5[%c0_3, %c0_4] : memref<64x256xf32, #tpu.memory_space<vmem>>, vector<64x256xf32>
      tpu.vector_store %arg5[%c0_3, %c0_4], %6 {strides = array<i32>} : memref<64x256xf32, #tpu.memory_space<vmem>>, vector<64x256xf32>,
    } else {
    }
    %c1_i32 = arith.constant 1 : i32
    %3 = arith.cmpi eq, %arg2, %c1_i32 : i32
    %4 = arith.extui %3 : i1 to i32
    %c0_i32_1 = arith.constant 0 : i32
    %5 = arith.cmpi ne, %4, %c0_i32_1 : i32
    scf.if %5 {
      %c0 = arith.constant 0 : index
      %c0_2 = arith.constant 0 : index
      %6 = vector.load %arg4[%c0, %c0_2] : memref<64x256xf32, #tpu.memory_space<vmem>>, vector<64x256xf32>
      %c0_3 = arith.constant 0 : index
      %c0_4 = arith.constant 0 : index
      %7 = vector.load %arg5[%c0_3, %c0_4] : memref<64x256xf32, #tpu.memory_space<vmem>>, vector<64x256xf32>
      tpu.vector_store %arg5[%c0_3, %c0_4], %6 {strides = array<i32>} : memref<64x256xf32, #tpu.memory_space<vmem>>, vector<64x256xf32>,
    } else {
    }
    return
  }
  func.func @transform_0(%arg0: i32, %arg1: i32, %arg2: i32) -> (i32, i32) {
    %c0_i32 = arith.constant 0 : i32
    return %arg0, %arg1 : i32, i32
  }
  func.func @transform_1(%arg0: i32, %arg1: i32, %arg2: i32) -> (i32, i32) {
    %c0_i32 = arith.constant 0 : i32
    return %arg0, %arg1 : i32, i32
  }
  func.func @transform_2(%arg0: i32, %arg1: i32, %arg2: i32) -> (i32, i32) {
    %c1_i32 = arith.constant 1 : i32
    %0 = arith.muli %arg2, %c1_i32 : i32
    %1 = arith.addi %0, %arg0 : i32
    %c0_i32 = arith.constant 0 : i32
    return %1, %arg1 : i32, i32
  }
}

</mosaic_0001>

<bundles_post_ra>
// kernel: tpu_custom_call.1
= control target key start
LH: loop header
LB: loop body
LE: loop exit
PB: predicated region body
PF: predicated region fallthrough
CT: control target
= control target key end

     0   :  { %7 = vsyncpa [#allocation3], 0  ;;  %s848_s0 = inlined_call_operand.hbm [shape: f32[64,256], index: 0, kind: input, shape index: {}]   ;;  %s849_s1 = inlined_call_operand.hbm [shape: f32[64,256], index: 1, kind: input, shape index: {}]   ;;  %s850_s2 = inlined_call_operand.hbm [shape: f32[128,256], index: 2, kind: output, shape index: {}]  }
   0x1   :  { %8 = vsyncpa [#allocation6], 0 }
   0x2   :  { %9 = vsyncpa [#allocation4], 0 }
   0x3   :  { %11 = vsyncpa [#allocation4 + $0x1], 0  ;;  %s654_s9 = smov 0   ;;  %s656_s10 = smov 0  }
   0x4   :  { %s658_s11 = smov 0   ;;  %s660_s12 = smov 0  }
   0x5   :  { %s662_s13 = smov 0   ;;  %s664_s14 = smov 0  }
   0x6 LB: > { %s395_s15 = sadd.s32 4294967295, %s630_s14   ;;  %s396_s16 = sadd.s32 4294967294, %s630_s14   ;;  %s630_s14 = sphi %s664_s14, %s17_s14   ;;  %s626_s13 = sphi %s662_s13, %s863_s13   ;;  %s622_s12 = sphi %s660_s12, %s862_s12   ;;  %s618_s11 = sphi %s658_s11, %s861_s11   ;;  %s614_s10 = sphi %s656_s10, %s860_s10   ;;  %s610_s9 = sphi %s654_s9, %s859_s9  }
   0x7   : > { %s29_s17 = sadd.s32 1, %s626_s13  ;;  %s103_s18 = sadd.s32 1, %s618_s11 }
   0x8   : > { %p30_p0 = scmp.ge.s32.totalorder %s29_s17, 2  ;;  %p113_p1 = scmp.ne.s32.totalorder %s618_s11, %s614_s10 }
   0x9   : > { %p114_p2 = scmp.eq.s32.totalorder %s395_s15, 1  ;;  %p119_p3 = scmp.ne.s32.totalorder %s614_s10, %s610_s9 }
   0xa   : > { %s865_s17 = smov (%p30_p0, %s29_s17), 0  ;;  %p120_p5 = scmp.eq.s32.totalorder %s396_s16, 1 }
   0xb   : > { %p694_p4 = por %p114_p2, %p113_p1  ;;  %s98_s20 = ssub.s32 %s626_s13, %s865_s17 }
   0xc   : > { %p397_p6 = scmp.ge.s32.totalorder %s630_s14, 1  ;;  %p101_p7 = scmp.eq.s32.totalorder %s98_s20, 0 }
   0xd   : > { %s852_s19 = scalar_select %p694_p4, 1, 0 }
   0xe   : > { %p701_p8 = por %p120_p5, %p119_p3  ;;  %p127_p9 = scmp.lt.s32.totalorder %s630_s14, 3 }
   0xf   : > { %s707_s22 = scalar_select %p101_p7, %s618_s11, %s103_s18  }
  0x10   : > { %s853_s21 = scalar_select %p701_p8, 1, 0 }
  0x11   : > { %p709_p10 = pnand %p397_p6, %p127_p9  ;;  %p713_p11 = scmp.eq.s32.totalorder %s395_s15, 0 }
  0x12   : > { %s632_s25 = smov [#allocation2]   ;;  %s633_s28 = smov [#allocation5]  }
  0x13   : > { %p424_p12 = pneg %p709_p10  ;;  %s145_s26 = sshll.u32 %s632_s25, 4  ;;  %s146_s26 = int_to_ptr.vmem [resolvable:$true] %s145_s26 }
  0x14   : > { %s164_s29 = sshll.u32 %s633_s28, 4  ;;  %s505_s30 = scalar_lea.vmem %s146_s26, 2048  ;;  %s165_s29 = int_to_ptr.vmem [resolvable:$true] %s164_s29 }
  0x15   : > { %p721_p13 = pnand %p713_p11, %p424_p12  ;;  %p506_p1 = scmp.ne.s32.totalorder %s146_s26, %s505_s30 }
  0x16   : > { %p513_p5 = scmp.lt.s32.totalorder %s146_s26, %s146_s26  ;;  %p514_p6 = scmp.lt.s32.totalorder %s505_s30, %s505_s30 }
  0x17   : > { %p496_p0 = pneg %p721_p13 }
  0x18   : > { %p515_p7 = por %p514_p6, %p513_p5 }
  0x19   : > { %p508_p2 = pnand %p506_p1, %p496_p0 }
  0x1b   : > { %p509_p3 = pneg %p508_p2 }
  0x1d   : > { %p516_p9 = pnand %p515_p7, %p509_p3 }
  0x1f   : > { %519 = shalt.err (!%p516_p9)
}
  0x20   : > { %s634_s3 = smov 256   ;;  %s635_s4 = smov 16  }
  0x21   : > { %427 = dma.hbm_to_vmem [thread:$0]  (!%p721_p13), %s848_s0, 2048, %s146_s26, [#allocation3], %s634_s3, %s634_s3, %s635_s4  }
  0x22   : > { %s531_s7 = scalar_lea.vmem %s165_s29, 2048  ;;  %p539_p8 = scmp.lt.s32.totalorder %s165_s29, %s165_s29 }
  0x23   : > { %p532_p12 = scmp.ne.s32.totalorder %s165_s29, %s531_s7  ;;  %p540_p4 = scmp.lt.s32.totalorder %s531_s7, %s531_s7 }
  0x25   : > { %p534_p1 = pnand %p532_p12, %p496_p0  ;;  %p541_p5 = por %p540_p4, %p539_p8 }
  0x27   : > { %p535_p2 = pneg %p534_p1 }
  0x29   : > { %p542_p3 = pnand %p541_p5, %p535_p2 }
  0x2b   : > { %545 = shalt.err (!%p542_p3)
}
  0x2c   : > { %430 = dma.hbm_to_vmem [thread:$0]  (!%p721_p13), %s849_s1, 2048, %s165_s29, [#allocation6], %s634_s3, %s634_s3, %s635_s4  }
  0x2d   : > { %180 = sbr.rel (%p709_p10) target bundleno = 110 (0x6e), region = 28 }
  0x32   : > { %597 = dma.done.wait (%p713_p11), [#allocation3], 2048  }
  0x33   : > { %599 = vsyncadd (%p713_p11), [#allocation3], 4294965248 }
  0x34   : > { %601 = dma.done.wait (%p713_p11), [#allocation6], 2048  }
  0x35   : > { %603 = vsyncadd (%p713_p11), [#allocation6], 4294965248  ;;  %s198_s16 = sand.u32 1, %s614_s10   ;;  %p404_p4 = scmp.ne.s32.totalorder %s622_s12, 0 }
  0x36   : > { %s403_s18 = sshll.u32 %s198_s16, 7 }
  0x37   : > { %s756_s20 = scalar_lea.vmem [#allocation7], %s403_s18  ;;  %211 = sbr.rel (%p404_p4) target bundleno = 69 (0x45), region = 40 }
  0x3c   : > { %v212_v0 = vld [vmem:[#allocation2] sm:$0xff]  ;;  %v213_v1 = vld [vmem:[#allocation2 + $0x8] sm:$0xff]  ;;  %v214_v2 = vld [vmem:[#allocation2 + $0x10] sm:$0xff] }
  0x3d   : > { %228 = vst [vmem:[%s756_s20] sm:$0xff] %v212_v0  ;;  %229 = vst [vmem:[%s756_s20 + $0x8] sm:$0xff] %v213_v1  ;;  %v215_v3 = vld [vmem:[#allocation2 + $0x18] sm:$0xff]  ;;  %v216_v4 = vld [vmem:[#allocation2 + $0x20] sm:$0xff] }
  0x3e   : > { %230 = vst [vmem:[%s756_s20 + $0x10] sm:$0xff] %v214_v2  ;;  %v217_v5 = vld [vmem:[#allocation2 + $0x28] sm:$0xff]  ;;  %231 = vst [vmem:[%s756_s20 + $0x18] sm:$0xff] %v215_v3  ;;  %v218_v6 = vld [vmem:[#allocation2 + $0x30] sm:$0xff] }
  0x3f   : > { %232 = vst [vmem:[%s756_s20 + $0x20] sm:$0xff] %v216_v4  ;;  %233 = vst [vmem:[%s756_s20 + $0x28] sm:$0xff] %v217_v5  ;;  %v219_v7 = vld [vmem:[#allocation2 + $0x38] sm:$0xff]  ;;  %v220_v8 = vld [vmem:[#allocation2 + $0x40] sm:$0xff] }
  0x40   : > { %234 = vst [vmem:[%s756_s20 + $0x30] sm:$0xff] %v218_v6  ;;  %235 = vst [vmem:[%s756_s20 + $0x38] sm:$0xff] %v219_v7  ;;  %v221_v9 = vld [vmem:[#allocation2 + $0x48] sm:$0xff]  ;;  %v222_v10 = vld [vmem:[#allocation2 + $0x50] sm:$0xff] }
  0x41   : > { %236 = vst [vmem:[%s756_s20 + $0x40] sm:$0xff] %v220_v8  ;;  %v223_v11 = vld [vmem:[#allocation2 + $0x58] sm:$0xff]  ;;  %237 = vst [vmem:[%s756_s20 + $0x48] sm:$0xff] %v221_v9  ;;  %v224_v12 = vld [vmem:[#allocation2 + $0x60] sm:$0xff] }
  0x42   : > { %238 = vst [vmem:[%s756_s20 + $0x50] sm:$0xff] %v222_v10  ;;  %239 = vst [vmem:[%s756_s20 + $0x58] sm:$0xff] %v223_v11  ;;  %v225_v13 = vld [vmem:[#allocation2 + $0x68] sm:$0xff]  ;;  %v226_v14 = vld [vmem:[#allocation2 + $0x70] sm:$0xff] }
  0x43   : > { %240 = vst [vmem:[%s756_s20 + $0x60] sm:$0xff] %v224_v12  ;;  %241 = vst [vmem:[%s756_s20 + $0x68] sm:$0xff] %v225_v13  ;;  %v227_v15 = vld [vmem:[#allocation2 + $0x78] sm:$0xff] }
  0x44   : > { %242 = vst [vmem:[%s756_s20 + $0x70] sm:$0xff] %v226_v14  ;;  %243 = vst [vmem:[%s756_s20 + $0x78] sm:$0xff] %v227_v15 }
  0x45 PF: > { %p405_p8 = scmp.ne.s32.totalorder %s622_s12, 1 }
  0x47   : > { %247 = sbr.rel (%p405_p8) target bundleno = 85 (0x55), region = 44 }
  0x4c   : > { %v248_v16 = vld [vmem:[#allocation5] sm:$0xff]  ;;  %v249_v17 = vld [vmem:[#allocation5 + $0x8] sm:$0xff]  ;;  %v250_v18 = vld [vmem:[#allocation5 + $0x10] sm:$0xff] }
  0x4d   : > { %264 = vst [vmem:[%s756_s20] sm:$0xff] %v248_v16  ;;  %265 = vst [vmem:[%s756_s20 + $0x8] sm:$0xff] %v249_v17  ;;  %v251_v19 = vld [vmem:[#allocation5 + $0x18] sm:$0xff]  ;;  %v252_v20 = vld [vmem:[#allocation5 + $0x20] sm:$0xff] }
  0x4e   : > { %266 = vst [vmem:[%s756_s20 + $0x10] sm:$0xff] %v250_v18  ;;  %v253_v21 = vld [vmem:[#allocation5 + $0x28] sm:$0xff]  ;;  %267 = vst [vmem:[%s756_s20 + $0x18] sm:$0xff] %v251_v19  ;;  %v254_v22 = vld [vmem:[#allocation5 + $0x30] sm:$0xff] }
  0x4f   : > { %268 = vst [vmem:[%s756_s20 + $0x20] sm:$0xff] %v252_v20  ;;  %269 = vst [vmem:[%s756_s20 + $0x28] sm:$0xff] %v253_v21  ;;  %v255_v23 = vld [vmem:[#allocation5 + $0x38] sm:$0xff]  ;;  %v256_v24 = vld [vmem:[#allocation5 + $0x40] sm:$0xff] }
  0x50   : > { %270 = vst [vmem:[%s756_s20 + $0x30] sm:$0xff] %v254_v22  ;;  %271 = vst [vmem:[%s756_s20 + $0x38] sm:$0xff] %v255_v23  ;;  %v257_v25 = vld [vmem:[#allocation5 + $0x48] sm:$0xff]  ;;  %v258_v26 = vld [vmem:[#allocation5 + $0x50] sm:$0xff] }
  0x51   : > { %272 = vst [vmem:[%s756_s20 + $0x40] sm:$0xff] %v256_v24  ;;  %v259_v27 = vld [vmem:[#allocation5 + $0x58] sm:$0xff]  ;;  %273 = vst [vmem:[%s756_s20 + $0x48] sm:$0xff] %v257_v25  ;;  %v260_v28 = vld [vmem:[#allocation5 + $0x60] sm:$0xff] }
  0x52   : > { %274 = vst [vmem:[%s756_s20 + $0x50] sm:$0xff] %v258_v26  ;;  %275 = vst [vmem:[%s756_s20 + $0x58] sm:$0xff] %v259_v27  ;;  %v261_v29 = vld [vmem:[#allocation5 + $0x68] sm:$0xff]  ;;  %v262_v30 = vld [vmem:[#allocation5 + $0x70] sm:$0xff] }
  0x53   : > { %276 = vst [vmem:[%s756_s20 + $0x60] sm:$0xff] %v260_v28  ;;  %277 = vst [vmem:[%s756_s20 + $0x68] sm:$0xff] %v261_v29  ;;  %v263_v31 = vld [vmem:[#allocation5 + $0x78] sm:$0xff] }
  0x54   : > { %278 = vst [vmem:[%s756_s20 + $0x70] sm:$0xff] %v262_v30  ;;  %279 = vst [vmem:[%s756_s20 + $0x78] sm:$0xff] %v263_v31 }
  0x55 PF: > { %s413_s23 = sshll.u32 %s622_s12, 11  ;;  %s298_s27 = sshll.u32 %s756_s20, 4  ;;  %s799_s27 = int_to_ptr.vmem [resolvable:$true] %s298_s27 }
  0x56   : > { %s796_s26 = scalar_lea.hbm %s850_s2, %s413_s23  ;;  %s803_s28 = scalar_lea.sflag [#allocation4], %s198_s16 }
  0x57   : > { %s546_s29 = scalar_lea.vmem %s799_s27, 2048  ;;  %p857_p11 = scmp.ne.s32.totalorder %s852_s19, 0 }
  0x58   : > { %p547_p10 = scmp.ne.s32.totalorder %s799_s27, %s546_s29  ;;  %s636_s12 = smov [#allocation7]  }
  0x59   : > { %s550_s30 = sshll.u32 %s636_s12, 4  ;;  %s551_s30 = int_to_ptr.vmem [resolvable:$false] %s550_s30 }
  0x5a   : > { %p548_p13 = pnand %p547_p10, %p857_p11  ;;  %s552_s3 = scalar_lea.vmem %s551_s30, 4096 }
  0x5b   : > { %p553_p6 = scmp.lt.s32.totalorder %s799_s27, %s551_s30  ;;  %p554_p7 = scmp.lt.s32.totalorder %s552_s3, %s546_s29 }
  0x5c   : > { %p549_p0 = pneg %p548_p13 }
  0x5d   : > { %p555_p9 = por %p554_p7, %p553_p6 }
  0x5f   : > { %p556_p12 = pnand %p555_p9, %p549_p0 }
  0x61   : > { %559 = shalt.err (!%p556_p12)
}
  0x62   : > { %s560_s4 = scalar_lea.hbm %s796_s26, 2048  ;;  %s564_s7 = scalar_lea.hbm %s850_s2, 4096 }
  0x63   : > { %p561_p1 = scmp.ne.s32.totalorder %s796_s26, %s560_s4  ;;  %p565_p3 = scmp.lt.s32.totalorder %s796_s26, %s850_s2 }
  0x64   : > { %p566_p4 = scmp.lt.s32.totalorder %s564_s7, %s560_s4 }
  0x65   : > { %p562_p2 = pnand %p561_p1, %p857_p11 }
  0x66   : > { %p567_p8 = por %p566_p4, %p565_p3 }
  0x67   : > { %p563_p5 = pneg %p562_p2 }
  0x69   : > { %p568_p10 = pnand %p567_p8, %p563_p5 }
  0x6b   : > { %571 = shalt.err (!%p568_p10)
}
  0x6c   : > { %s637_s16 = smov 256   ;;  %s638_s18 = smov 16  }
  0x6d   : > { %422 = dma.vmem_to_hbm [thread:$0]  (%p857_p11), %s799_s27, 2048, %s796_s26, %s803_s28, %s637_s16, %s637_s16, %s638_s18  }
  0x6e PF: > { %p439_p13 = scmp.ge.s32.totalorder %s630_s14, 2  ;;  %s313_s20 = sand.u32 1, %s610_s9  }
  0x6f   : > { %p858_p0 = scmp.ne.s32.totalorder %s853_s21, 0  ;;  %s314_s23 = scalar_lea.sflag [#allocation4], %s313_s20 }
  0x71   : > { %p432_p6 = pnand %p439_p13, %p858_p0 }
  0x73   : > { %p433_p7 = pneg %p432_p6 }
  0x75   : > { %605 = dma.done.wait (%p433_p7), %s314_s23, 2048  }
  0x76   : > { %607 = vsyncadd (%p433_p7), %s314_s23, 4294965248  ;;  %s17_s14 = sadd.s32 1, %s630_s14   ;;  %s859_s9 = smov %s614_s10 }
  0x77   : > { %p14_p9 = scmp.ge.s32.totalorder %s17_s14, 4   ;;  %s860_s10 = smov %s618_s11 }
  0x78   : > { %s861_s11 = smov %s707_s22  ;;  %s862_s12 = smov %s626_s13 }
  0x79   : > { %s863_s13 = smov %s865_s17  ;;  %16 = sbr.rel (!%p14_p9) target bundleno = 6 (0x6), region = 79 }
  0x7e   :  { %319 = vsyncpa [#allocation3], 1 }
  0x7f   :  { %321 = vsyncpa [#allocation3 + $0x1], 1 }
  0x80   :  { %322 = vsyncpa [#allocation6], 1 }
  0x81   :  { %323 = vsyncpa [#allocation4], 1 }
  0x82   :  { %325 = vsyncpa [#allocation4 + $0x1], 1 }

</bundles_post_ra>
